<compile_context>
chip_gen: v5e
topology: v5e:2x2
jax: 0.10.0
libtpu: 0.0.40
codegen_flags: <defaults>
</compile_context>

<pallas_src>
import functools

import jax
import jax.numpy as jnp
from jax import lax
from jax.experimental import pallas as pl
from jax.experimental.pallas import tpu as pltpu


def _shift_conv_kernel(*refs, n_segment, fold, tail_sizes):
    """One grid step = one (C, HW_tile) slab of frame t.

    refs = (x_nxt, x_prv, *tail_pieces, w, b, o, shifted_scratch)

    x_nxt   : (1, fold, HWT)  frame t+1 (clamped), channels [0, fold)
    x_prv   : (1, fold, HWT)  frame t-1 (clamped), channels [fold, 2*fold)
    tail[k] : (1, sz_k, HWT)  frame t, block-aligned pieces of [2*fold, C)
    w       : (C, C)          1x1-conv weight, (Cout, Cin), activation dtype
    b       : (C, 1)          bias, float32
    o       : (1, C, HWT)
    shifted : (C, HWT)        VMEM scratch holding the shifted operand
    """
    n_tail = len(tail_sizes)
    x_nxt_ref, x_prv_ref = refs[0], refs[1]
    tail_refs = refs[2:2 + n_tail]
    w_ref, b_ref, o_ref, shifted_ref = refs[2 + n_tail:]

    i = pl.program_id(0)
    t = lax.rem(i, n_segment)
    is_first = t == 0
    is_last = t == n_segment - 1
    not_first = t > 0
    not_last = t < n_segment - 1

    hw_tile = shifted_ref.shape[1]
    zeros_fold = jnp.zeros((fold, hw_tile), dtype=shifted_ref.dtype)

    # Channels [0, fold): next frame; zero on the last frame of each clip
    # (matches torch.zeros_like boundary fill).  pl.when gating means only
    # 2/n_segment of steps take the zeroing path -- no full-tensor selects.
    @pl.when(not_last)
    def _():
        shifted_ref[0:fold, :] = x_nxt_ref[0]

    @pl.when(is_last)
    def _():
        shifted_ref[0:fold, :] = zeros_fold

    # Channels [fold, 2*fold): previous frame; zero on the first frame.
    @pl.when(not_first)
    def _():
        shifted_ref[fold:2 * fold, :] = x_prv_ref[0]

    @pl.when(is_first)
    def _():
        shifted_ref[fold:2 * fold, :] = zeros_fold

    # Channels [2*fold, C): unshifted tail of the current frame.
    off = 2 * fold
    for ref, sz in zip(tail_refs, tail_sizes):
        shifted_ref[off:off + sz, :] = ref[0]
        off += sz

    y = jnp.dot(w_ref[...], shifted_ref[...],
                preferred_element_type=jnp.float32)
    y = y + b_ref[...]                      # bias already f32 -> no in-kernel cast
    o_ref[0] = y.astype(o_ref.dtype)


def _round_up(x, m):
    return (x + m - 1) // m * m


def _tail_segments(c, fold):
    """Decompose channels [2*fold, c) into block-aligned (start, size) pieces.

    Each piece satisfies start % size == 0 so a plain block-indexed BlockSpec
    (block index = start // size) fetches exactly [start, start+size).  Sizes
    are multiples of fold, so sublane alignment is inherited from fold.
    Typical n_div=8 gives 2 pieces; n_div=4 gives 1; n_div=2 gives 0.
    """
    segs = []
    s = 2 * fold
    while s < c:
        best = fold
        d = fold
        while d <= c - s:
            if s % d == 0:
                best = d
            d += fold
        segs.append((s, best))
        s += best
    return segs


def temporal_shift_conv(x_nchw, weight, bias, *, n_segment, n_div,
                        vmem_budget_bytes=28 * 1024 * 1024):
    """Fused TemporalShift + 1x1 conv.

    x_nchw: (NT, C, H, W); weight: (C, C, 1, 1); bias: (C,).
    """
    nt, c, h, w = x_nchw.shape
    assert nt % n_segment == 0
    assert weight.shape == (c, c, 1, 1) and bias.shape == (c,)
    fold = c // n_div
    hw = h * w

    dtype = x_nchw.dtype
    itemsize = jnp.dtype(dtype).itemsize
    # Narrow (fold-channel) blocks need sublane alignment: 8 rows for 32-bit
    # dtypes, 16 for 16-bit (bf16 fast path on v6e/v7x).
    sublane = 8 * (4 // itemsize)
    if fold == 0 or fold % sublane != 0 or 2 * fold > c:
        # TODO(synk): add a fallback kernel with full-channel neighbour blocks
        # for folds that are not sublane-aligned (or n_div == 1).
        raise NotImplementedError(
            f"fold={fold} must be a non-zero multiple of {sublane} with 2*fold <= C")

    # ---- VMEM-budget-aware spatial tiling (lane-dense multiples of 128) ----
    # Per-step working set: 2x double-buffered input channels (exactly C of
    # them after the traffic fix) + 2x double-buffered output + 1x shifted
    # scratch, plus the VMEM-resident weight (counted twice to be safe).
    weight_bytes = 2 * c * c * itemsize
    avail = max(vmem_budget_bytes - weight_bytes, 2 * 1024 * 1024)
    per_lane = 5 * c * itemsize
    hw_tile_cap = max(128, min((avail // per_lane) // 128 * 128, 4096))

    n_hw = -(-hw // hw_tile_cap)                           # cdiv
    hw_tile = _round_up(-(-hw // n_hw), 128)               # <= hw_tile_cap
    hw_padded = hw_tile * n_hw

    # Free layout change (reshape only); pad HW so stores stay unmasked and
    # per-buffer VMEM stays bounded (crop after the kernel).
    x = x_nchw.reshape(nt, c, hw)
    if hw_padded != hw:
        x = jnp.pad(x, ((0, 0), (0, 0), (0, hw_padded - hw)))

    # Weight in the activation dtype (bf16 path: half HBM read + half resident
    # VMEM, native MXU operand); bias stays f32 for the f32 accumulator.
    w_mat = weight[:, :, 0, 0].astype(dtype)               # (Cout, Cin)
    b_col = bias.reshape(c, 1).astype(jnp.float32)

    tail = _tail_segments(c, fold)
    tail_sizes = tuple(sz for _, sz in tail)

    kernel = functools.partial(_shift_conv_kernel, n_segment=n_segment,
                               fold=fold, tail_sizes=tail_sizes)

    in_specs = [
        # frame t+1 (clamped; zeroed in-kernel at clip boundary), ch [0, fold)
        pl.BlockSpec((1, fold, hw_tile),
                     lambda i, j: (jnp.minimum(i + 1, nt - 1), 0, j)),
        # frame t-1 (clamped; zeroed in-kernel at clip boundary), ch [fold, 2*fold)
        pl.BlockSpec((1, fold, hw_tile),
                     lambda i, j: (jnp.maximum(i - 1, 0), 1, j)),
    ]
    # frame t, channels [2*fold, C): block-aligned pieces only (no redundant
    # re-read of the first 2*fold channels -> exactly C channels read/frame).
    for start, sz in tail:
        in_specs.append(
            pl.BlockSpec((1, sz, hw_tile),
                         lambda i, j, blk=start // sz: (i, blk, j)))
    # weight / bias stay VMEM-resident (constant index_map).
    in_specs += [pl.BlockSpec((c, c), lambda i, j: (0, 0)),
                 pl.BlockSpec((c, 1), lambda i, j: (0, 0))]

    flops = 2 * nt * hw_padded * c * c
    bytes_accessed = (itemsize * nt * hw_padded * 2 * c       # in + out
                      + c * c * itemsize + 4 * c)             # weight + bias

    vmem_est = 5 * c * hw_tile * itemsize + weight_bytes + 8 * c + (1 << 20)
    vmem_limit = int(min(max(int(vmem_est * 1.25), 4 * 1024 * 1024),
                         48 * 1024 * 1024))

    out = pl.pallas_call(
        kernel,
        out_shape=jax.ShapeDtypeStruct((nt, c, hw_padded), dtype),
        grid_spec=pltpu.PrefetchScalarGridSpec(
            num_scalar_prefetch=0,
            grid=(nt, n_hw),
            in_specs=in_specs,
            out_specs=pl.BlockSpec((1, c, hw_tile), lambda i, j: (i, 0, j)),
            scratch_shapes=[pltpu.VMEM((c, hw_tile), dtype)],
        ),
        compiler_params=pltpu.CompilerParams(
            dimension_semantics=("parallel", "parallel"),
            vmem_limit_bytes=vmem_limit,
        ),
        cost_estimate=pl.CostEstimate(
            flops=flops, transcendentals=0, bytes_accessed=bytes_accessed),
    )(*([x] * (2 + len(tail))), w_mat, b_col)

    if hw_padded != hw:
        out = out[:, :, :hw]
    return out.reshape(nt, c, h, w)


def _reference(x_nchw, weight, bias, *, n_segment, n_div):
    """Pure-JAX reference mirroring the PyTorch code."""
    nt, c, h, w = x_nchw.shape
    n_batch = nt // n_segment
    fold = c // n_div
    xv = x_nchw.reshape(n_batch, n_segment, c, h, w)
    out = jnp.zeros_like(xv)
    out = out.at[:, :-1, :fold].set(xv[:, 1:, :fold])
    out = out.at[:, 1:, fold:2 * fold].set(xv[:, :-1, fold:2 * fold])
    out = out.at[:, :, 2 * fold:].set(xv[:, :, 2 * fold:])
    shifted = out.reshape(nt, c, h, w)
    y = jnp.einsum('nchw,oc->nohw', shifted, weight[:, :, 0, 0])
    return y + bias[None, :, None, None]


if __name__ == "__main__":
    n_segment = 4
    n_div = 8
    n_batch, c, h, w = 2, 128, 16, 16      # fold = 16: aligned for f32 and bf16
    nt = n_batch * n_segment

    key = jax.random.PRNGKey(0)
    kx, kw, kb = jax.random.split(key, 3)
    x = jax.random.normal(kx, (nt, c, h, w), dtype=jnp.float32)
    weight = 0.02 * jax.random.normal(kw, (c, c, 1, 1), dtype=jnp.float32)
    bias = 0.01 * jax.random.normal(kb, (c,), dtype=jnp.float32)

    y_ref = _reference(x, weight, bias, n_segment=n_segment, n_div=n_div)

    # fp32 path
    y = temporal_shift_conv(x, weight, bias, n_segment=n_segment, n_div=n_div)
    y = jax.block_until_ready(y)
    assert y.shape == (nt, c, h, w)
    assert jnp.allclose(y, y_ref, atol=1e-4, rtol=1e-4)

    # bf16 storage/compute path (f32 accumulate) -- v6e/v7x bandwidth fast path
    y_bf16 = temporal_shift_conv(x.astype(jnp.bfloat16), weight, bias,
                                 n_segment=n_segment, n_div=n_div)
    y_bf16 = jax.block_until_ready(y_bf16)
    assert jnp.allclose(y_bf16.astype(jnp.float32), y_ref, atol=5e-2, rtol=5e-2)

    # non-128-multiple spatial size -> exercises the pad-to-lane-dense path
    h2 = w2 = 10
    x2 = jax.random.normal(kx, (nt, c, h2, w2), dtype=jnp.float32)
    y2_ref = _reference(x2, weight, bias, n_segment=n_segment, n_div=n_div)
    y2 = temporal_shift_conv(x2, weight, bias, n_segment=n_segment, n_div=n_div)
    y2 = jax.block_until_ready(y2)
    assert jnp.allclose(y2, y2_ref, atol=1e-4, rtol=1e-4)

    # n_div=2 (2*fold == C) -> exercises the empty-tail (no current-frame DMA) path
    c3 = 64
    x3 = jax.random.normal(kx, (nt, c3, 8, 8), dtype=jnp.float32)
    w3 = 0.02 * jax.random.normal(kw, (c3, c3, 1, 1), dtype=jnp.float32)
    b3 = 0.01 * jax.random.normal(kb, (c3,), dtype=jnp.float32)
    y3_ref = _reference(x3, w3, b3, n_segment=n_segment, n_div=2)
    y3 = temporal_shift_conv(x3, w3, b3, n_segment=n_segment, n_div=2)
    y3 = jax.block_until_ready(y3)
    assert jnp.allclose(y3, y3_ref, atol=1e-4, rtol=1e-4)

    print("KERNEL_OK")
</pallas_src>

<mosaic_0001>
module attributes {stable_mosaic.version = 11 : i64} {
  func.func @_shift_conv_kernel(%arg0: i32, %arg1: i32, %arg2: memref<1x16x256xf32, #tpu.memory_space<vmem>>, %arg3: memref<1x16x256xf32, #tpu.memory_space<vmem>>, %arg4: memref<1x32x256xf32, #tpu.memory_space<vmem>>, %arg5: memref<1x64x256xf32, #tpu.memory_space<vmem>>, %arg6: memref<128x128xf32, #tpu.memory_space<vmem>>, %arg7: memref<128x1xf32, #tpu.memory_space<vmem>>, %arg8: memref<1x128x256xf32, #tpu.memory_space<vmem>>, %arg9: memref<128x256xf32, #tpu.memory_space<vmem>>) attributes {dimension_semantics = [#tpu.dimension_semantics<parallel>, #tpu.dimension_semantics<parallel>], iteration_bounds = array<i64: 8, 1>, scalar_prefetch = 0 : i64, scratch_operands = 1 : i64, tpu.core_type = #tpu.core_type<tc>, window_params = [{transform_indices = @transform_0, window_bounds = array<i64: 1, 16, 256>}, {transform_indices = @transform_1, window_bounds = array<i64: 1, 16, 256>}, {transform_indices = @transform_2, window_bounds = array<i64: 1, 32, 256>}, {transform_indices = @transform_3, window_bounds = array<i64: 1, 64, 256>}, {pipeline_mode = #tpu.pipeline_mode<synchronous>, transform_indices = @transform_4, window_bounds = array<i64: 128, 128>}, {pipeline_mode = #tpu.pipeline_mode<synchronous>, transform_indices = @transform_5, window_bounds = array<i64: 128, 1>}, {transform_indices = @transform_6, window_bounds = array<i64: 1, 128, 256>}]} {
    %c4_i32 = arith.constant 4 : i32
    %0 = arith.remsi %arg0, %c4_i32 : i32
    %c0_i32 = arith.constant 0 : i32
    %1 = arith.cmpi eq, %0, %c0_i32 : i32
    %c3_i32 = arith.constant 3 : i32
    %2 = arith.cmpi eq, %0, %c3_i32 : i32
    %c0_i32_0 = arith.constant 0 : i32
    %3 = arith.cmpi sgt, %0, %c0_i32_0 : i32
    %c3_i32_1 = arith.constant 3 : i32
    %4 = arith.cmpi slt, %0, %c3_i32_1 : i32
    %cst = arith.constant 0.000000e+00 : f32
    %5 = vector.broadcast %cst : f32 to vector<16x256xf32>
    %6 = arith.extui %4 : i1 to i32
    %c0_i32_2 = arith.constant 0 : i32
    %7 = arith.cmpi ne, %6, %c0_i32_2 : i32
    scf.if %7 {
      %c0_23 = arith.constant 0 : index
      %c0_24 = arith.constant 0 : index
      %c0_25 = arith.constant 0 : index
      %29 = vector.load %arg2[%c0_23, %c0_24, %c0_25] : memref<1x16x256xf32, #tpu.memory_space<vmem>>, vector<1x16x256xf32>
      %30 = vector.shape_cast %29 : vector<1x16x256xf32> to vector<16x256xf32>
      %c0_26 = arith.constant 0 : index
      %c0_27 = arith.constant 0 : index
      %31 = vector.load %arg9[%c0_26, %c0_27] : memref<128x256xf32, #tpu.memory_space<vmem>>, vector<16x256xf32>
      tpu.vector_store %arg9[%c0_26, %c0_27], %30 {strides = array<i32>} : memref<128x256xf32, #tpu.memory_space<vmem>>, vector<16x256xf32>,
    } else {
    }
    %8 = arith.extui %2 : i1 to i32
    %c0_i32_3 = arith.constant 0 : i32
    %9 = arith.cmpi ne, %8, %c0_i32_3 : i32
    scf.if %9 {
      %c0_23 = arith.constant 0 : index
      %c0_24 = arith.constant 0 : index
      %29 = vector.load %arg9[%c0_23, %c0_24] : memref<128x256xf32, #tpu.memory_space<vmem>>, vector<16x256xf32>
      tpu.vector_store %arg9[%c0_23, %c0_24], %5 {strides = array<i32>} : memref<128x256xf32, #tpu.memory_space<vmem>>, vector<16x256xf32>,
    } else {
    }
    %10 = arith.extui %3 : i1 to i32
    %c0_i32_4 = arith.constant 0 : i32
    %11 = arith.cmpi ne, %10, %c0_i32_4 : i32
    scf.if %11 {
      %c0_23 = arith.constant 0 : index
      %c0_24 = arith.constant 0 : index
      %c0_25 = arith.constant 0 : index
      %29 = vector.load %arg3[%c0_23, %c0_24, %c0_25] : memref<1x16x256xf32, #tpu.memory_space<vmem>>, vector<1x16x256xf32>
      %30 = vector.shape_cast %29 : vector<1x16x256xf32> to vector<16x256xf32>
      %c16 = arith.constant 16 : index
      %c0_26 = arith.constant 0 : index
      %31 = vector.load %arg9[%c16, %c0_26] : memref<128x256xf32, #tpu.memory_space<vmem>>, vector<16x256xf32>
      tpu.vector_store %arg9[%c16, %c0_26], %30 {strides = array<i32>} : memref<128x256xf32, #tpu.memory_space<vmem>>, vector<16x256xf32>,
    } else {
    }
    %12 = arith.extui %1 : i1 to i32
    %c0_i32_5 = arith.constant 0 : i32
    %13 = arith.cmpi ne, %12, %c0_i32_5 : i32
    scf.if %13 {
      %c16 = arith.constant 16 : index
      %c0_23 = arith.constant 0 : index
      %29 = vector.load %arg9[%c16, %c0_23] : memref<128x256xf32, #tpu.memory_space<vmem>>, vector<16x256xf32>
      tpu.vector_store %arg9[%c16, %c0_23], %5 {strides = array<i32>} : memref<128x256xf32, #tpu.memory_space<vmem>>, vector<16x256xf32>,
    } else {
    }
    %c0 = arith.constant 0 : index
    %c0_6 = arith.constant 0 : index
    %c0_7 = arith.constant 0 : index
    %14 = vector.load %arg4[%c0, %c0_6, %c0_7] : memref<1x32x256xf32, #tpu.memory_space<vmem>>, vector<1x32x256xf32>
    %15 = vector.shape_cast %14 : vector<1x32x256xf32> to vector<32x256xf32>
    %c32 = arith.constant 32 : index
    %c0_8 = arith.constant 0 : index
    %16 = vector.load %arg9[%c32, %c0_8] : memref<128x256xf32, #tpu.memory_space<vmem>>, vector<32x256xf32>
    tpu.vector_store %arg9[%c32, %c0_8], %15 {strides = array<i32>} : memref<128x256xf32, #tpu.memory_space<vmem>>, vector<32x256xf32>,
    %c0_9 = arith.constant 0 : index
    %c0_10 = arith.constant 0 : index
    %c0_11 = arith.constant 0 : index
    %17 = vector.load %arg5[%c0_9, %c0_10, %c0_11] : memref<1x64x256xf32, #tpu.memory_space<vmem>>, vector<1x64x256xf32>
    %18 = vector.shape_cast %17 : vector<1x64x256xf32> to vector<64x256xf32>
    %c64 = arith.constant 64 : index
    %c0_12 = arith.constant 0 : index
    %19 = vector.load %arg9[%c64, %c0_12] : memref<128x256xf32, #tpu.memory_space<vmem>>, vector<64x256xf32>
    tpu.vector_store %arg9[%c64, %c0_12], %18 {strides = array<i32>} : memref<128x256xf32, #tpu.memory_space<vmem>>, vector<64x256xf32>,
    %c0_13 = arith.constant 0 : index
    %c0_14 = arith.constant 0 : index
    %20 = vector.load %arg6[%c0_13, %c0_14] : memref<128x128xf32, #tpu.memory_space<vmem>>, vector<128x128xf32>
    %c0_15 = arith.constant 0 : index
    %c0_16 = arith.constant 0 : index
    %21 = vector.load %arg9[%c0_15, %c0_16] : memref<128x256xf32, #tpu.memory_space<vmem>>, vector<128x256xf32>
    %cst_17 = arith.constant dense<0.000000e+00> : vector<128x256xf32>
    %22 = tpu.matmul %20, %21, %cst_17 {dimension_numbers = #tpu.dot_dimension_numbers<[1], [0], [0], [1], [0, 0, 1, 1], [], []>} : vector<128x128xf32>, vector<128x256xf32>, vector<128x256xf32> -> vector<128x256xf32>
    %c0_18 = arith.constant 0 : index
    %c0_19 = arith.constant 0 : index
    %23 = vector.load %arg7[%c0_18, %c0_19] : memref<128x1xf32, #tpu.memory_space<vmem>>, vector<128x1xf32>
    %24 = vector.broadcast %23 : vector<128x1xf32> to vector<128x256xf32>
    %25 = arith.addf %22, %24 : vector<128x256xf32>
    %c0_20 = arith.constant 0 : index
    %c0_21 = arith.constant 0 : index
    %c0_22 = arith.constant 0 : index
    %26 = vector.load %arg8[%c0_20, %c0_21, %c0_22] : memref<1x128x256xf32, #tpu.memory_space<vmem>>, vector<1x128x256xf32>
    %27 = vector.shape_cast %26 : vector<1x128x256xf32> to vector<128x256xf32>
    %28 = vector.shape_cast %25 : vector<128x256xf32> to vector<1x128x256xf32>
    tpu.vector_store %arg8[%c0_20, %c0_21, %c0_22], %28 {strides = array<i32>} : memref<1x128x256xf32, #tpu.memory_space<vmem>>, vector<1x128x256xf32>,
    return
  }
  func.func @transform_0(%arg0: i32, %arg1: i32) -> (i32, i32, i32) {
    %c1_i32 = arith.constant 1 : i32
    %0 = arith.addi %arg0, %c1_i32 : i32
    %c7_i32 = arith.constant 7 : i32
    %1 = arith.minsi %0, %c7_i32 : i32
    %c0_i32 = arith.constant 0 : i32
    %c0_i32_0 = arith.constant 0 : i32
    return %1, %c0_i32, %arg1 : i32, i32, i32
  }
  func.func @transform_1(%arg0: i32, %arg1: i32) -> (i32, i32, i32) {
    %c1_i32 = arith.constant 1 : i32
    %0 = arith.subi %arg0, %c1_i32 : i32
    %c0_i32 = arith.constant 0 : i32
    %1 = arith.maxsi %0, %c0_i32 : i32
    %c1_i32_0 = arith.constant 1 : i32
    %c0_i32_1 = arith.constant 0 : i32
    return %1, %c1_i32_0, %arg1 : i32, i32, i32
  }
  func.func @transform_2(%arg0: i32, %arg1: i32) -> (i32, i32, i32) {
    %c1_i32 = arith.constant 1 : i32
    %c0_i32 = arith.constant 0 : i32
    return %arg0, %c1_i32, %arg1 : i32, i32, i32
  }
  func.func @transform_3(%arg0: i32, %arg1: i32) -> (i32, i32, i32) {
    %c1_i32 = arith.constant 1 : i32
    %c0_i32 = arith.constant 0 : i32
    return %arg0, %c1_i32, %arg1 : i32, i32, i32
  }
  func.func @transform_4(%arg0: i32, %arg1: i32) -> (i32, i32) {
    %c0_i32 = arith.constant 0 : i32
    %c0_i32_0 = arith.constant 0 : i32
    %c0_i32_1 = arith.constant 0 : i32
    return %c0_i32, %c0_i32_0 : i32, i32
  }
  func.func @transform_5(%arg0: i32, %arg1: i32) -> (i32, i32) {
    %c0_i32 = arith.constant 0 : i32
    %c0_i32_0 = arith.constant 0 : i32
    %c0_i32_1 = arith.constant 0 : i32
    return %c0_i32, %c0_i32_0 : i32, i32
  }
  func.func @transform_6(%arg0: i32, %arg1: i32) -> (i32, i32, i32) {
    %c0_i32 = arith.constant 0 : i32
    %c0_i32_0 = arith.constant 0 : i32
    return %arg0, %c0_i32, %arg1 : i32, i32, i32
  }
}

</mosaic_0001>

<bundles_post_ra>
// kernel: tpu_custom_call.1
= control target key start
LH: loop header
LB: loop body
LE: loop exit
PB: predicated region body
PF: predicated region fallthrough
CT: control target
= control target key end

     0   :  { %s2032_s0 = inlined_call_operand.hbm [shape: f32[8,128,256], index: 0, kind: input, shape index: {}]   ;;  %s2033_s1 = inlined_call_operand.hbm [shape: f32[8,128,256], index: 1, kind: input, shape index: {}]   ;;  %s2034_s2 = inlined_call_operand.hbm [shape: f32[8,128,256], index: 2, kind: input, shape index: {}]   ;;  %s2035_s3 = inlined_call_operand.hbm [shape: f32[8,128,256], index: 3, kind: input, shape index: {}]   ;;  %s2036_s4 = inlined_call_operand.vmem [shape: f32[128,128], index: 4, kind: input, shape index: {}]   ;;  %s2037_s5 = inlined_call_operand.vmem [shape: f32[128,1], index: 5, kind: input, shape index: {}]   ;;  %s2038_s6 = inlined_call_operand.hbm [shape: f32[8,128,256], index: 6, kind: output, shape index: {}]  }
   0x1   :  { %2054 = sst [smem:[#allocation27_spill]] %s2032_s0 }
   0x2   :  { %2055 = sst [smem:[#allocation28_spill]] %s2033_s1 }
   0x3   :  { %2056 = sst [smem:[#allocation29_spill]] %s2035_s3 }
   0x4   :  { %2057 = sst [smem:[#allocation30_spill]] %s2036_s4 }
   0x5   :  { %2058 = sst [smem:[#allocation31_spill]] %s2037_s5 }
   0x6   :  { %2059 = sst [smem:[#allocation32_spill]] %s2038_s6 }
   0x7   :  { %11 = vsyncpa [#allocation4], 0 }
   0x8   :  { %13 = vsyncpa [#allocation4 + $0x1], 0 }
   0x9   :  { %14 = vsyncpa [#allocation7], 0 }
   0xa   :  { %16 = vsyncpa [#allocation7 + $0x1], 0 }
   0xb   :  { %17 = vsyncpa [#allocation10], 0 }
   0xc   :  { %19 = vsyncpa [#allocation10 + $0x1], 0 }
   0xd   :  { %20 = vsyncpa [#allocation5], 0 }
   0xe   :  { %22 = vsyncpa [#allocation5 + $0x1], 0  ;;  %s1553_s21 = smov 0   ;;  %s1555_s22 = smov 0  }
   0xf   :  { %s1557_s23 = smov 0   ;;  %s1559_s24 = smov 0  }
  0x10   :  { %s1561_s25 = smov 0   ;;  %s1563_s26 = smov 0  }
  0x11   :  { %s1565_s27 = smov 0   ;;  %s1567_s28 = smov 0  }
  0x12   :  { %s1569_s29 = smov 0   ;;  %s1571_s30 = smov 0  }
  0x13   :  { %s1573_s7 = smov 0   ;;  %s1575_s8 = smov 0  }
  0x14 LB: > { %2060 = sst [smem:[#allocation17_spill]] %s1481_s25  ;;  %s1612_s9 = sadd.s32 4294967295, %s1509_s8   ;;  %s1509_s8 = sphi %s1575_s8, %s28_s8   ;;  %s1505_s7 = sphi %s1573_s7, %s2100_s7   ;;  %s1501_s30 = sphi %s1571_s30, %s2099_s30   ;;  %s1497_s29 = sphi %s1569_s29, %s2098_s29   ;;  %s1493_s28 = sphi %s1567_s28, %s2105_s28   ;;  %s1489_s27 = sphi %s1565_s27, %s2104_s27   ;;  %s1485_s26 = sphi %s1563_s26, %s2096_s26   ;;  %s1481_s25 = sphi %s1561_s25, %s2095_s25   ;;  %s1477_s24 = sphi %s1559_s24, %s2094_s24   ;;  %s1473_s23 = sphi %s1557_s23, %s2103_s23   ;;  %s1469_s22 = sphi %s1555_s22, %s2102_s22   ;;  %s1465_s21 = sphi %s1553_s21, %s2101_s21  }
  0x15   : > { %2061 = sst [smem:[#allocation18_spill]] %s1485_s26  ;;  %s1615_s10 = sadd.s32 1, %s1505_s7 }
  0x16   : > { %2062 = sst [smem:[#allocation19_spill]] %s1497_s29  ;;  %p42_p0 = scmp.ge.s32.totalorder %s1615_s10, 8 }
  0x17   : > { %2063 = sst [smem:[#allocation20_spill]] %s1501_s30  ;;  %p63_p1 = scmp.eq.s32.totalorder %s1509_s8, 0 }
  0x18   : > { %2064 = sst [smem:[#allocation21_spill]] %s1505_s7  ;;  %p69_p2 = scmp.eq.s32.totalorder %s1612_s9, 0 }
  0x19   : > { %s1042_s11 = sadd.s32 4294967295, %s1505_s7  ;;  %s89_s13 = sadd.s32 1, %s1485_s26 }
  0x1a   : > { %s1622_s12 = scalar_select %p42_p0, 0, %s1615_s10  }
  0x1b   : > { %p79_p3 = scmp.gt.s32.totalorder %s1042_s11, 0  ;;  %p96_p4 = scmp.ne.s32.totalorder %s1485_s26, %s1481_s25 }
  0x1c   : > { %2065 = sst [smem:[#allocation22_spill]] %s1622_s12  ;;  %s1043_s14 = sadd.s32 4294967295, %s1622_s12 }
  0x1d   : > { %s2107_s11 = smov (!%p79_p3, %s1042_s11), 0  ;;  %p82_p5 = scmp.gt.s32.totalorder %s1043_s14, 0 }
  0x1e   : > { %p1630_p6 = por %p96_p4, %p63_p1  ;;  %p102_p7 = scmp.ne.s32.totalorder %s1481_s25, %s1477_s24 }
  0x1f   : > { %s112_s16 = ssub.s32 %s1505_s7, %s1622_s12  ;;  %s2109_s14 = smov (!%p82_p5, %s1043_s14), 0 }
  0x20   : > { %p1639_p8 = por %p102_p7, %p69_p2  ;;  %p1643_p9 = scmp.eq.s32.totalorder %s112_s16, 0 }
  0x21   : > { %s84_s19 = ssub.s32 %s2107_s11, %s2109_s14  ;;  %p1139_p11 = scmp.lt.s32.totalorder %s1509_s8, 8 }
  0x22   : > { %s2067_s17 = scalar_select %p1639_p8, 1, 0 }
  0x23   : > { %p87_p10 = scmp.eq.s32.totalorder %s84_s19, 0  ;;  %s285_s24 = sand.u32 1, %s1509_s8  }
  0x24   : > { %2068 = sst [smem:[#allocation23_spill]] %s2067_s17  ;;  %s287_s6 = sand.u32 1, %s1485_s26  }
  0x25   : > { %s1649_s20 = scalar_select %p87_p10, %s1485_s26, %s89_s13  }
  0x26   : > { %s1049_s4 = sshll.u32 %s287_s6, 5  ;;  %s1076_s5 = sshll.u32 %s2107_s11, 8 }
  0x27   : > { %2070 = sst [smem:[#allocation24_spill]] %s1649_s20  ;;  %s289_s16 = scalar_lea.vmem [#allocation6], %s1049_s4 }
  0x28   : > { %s2071_s1 = sld [smem:[#allocation28_spill]]  ;;  %s303_s3 = sshll.u32 %s289_s16, 4  ;;  %s304_s3 = int_to_ptr.vmem [resolvable:$true] %s303_s3 }
  0x29   : > { %p1126_p12 = pnand %p1139_p11, %p1630_p6  ;;  %p1059_p13 = scmp.ge.s32.totalorder %s1509_s8, 1 }
  0x2a   : > { %p361_p0 = scmp.lt.s32.totalorder %s1509_s8, 9  ;;  %s1662_s4 = scalar_lea.sflag [#allocation7], %s285_s24 }
  0x2b   : > { %s2048_s6 = smov 16   ;;  %p45_p4 = scmp.lt.s32.totalorder %s1615_s10, 7 }
  0x2c   : > { %p1668_p3 = pnand %p1059_p13, %p361_p0  ;;  %s47_s30 = sadd.s32 1, %s1622_s12 }
  0x2d   : > { %s55_s11 = sadd.s32 1, %s1497_s29  ;;  %s2111_s10 = smov (!%p45_p4, %s1615_s10), 7 }
  0x2e   : > { %s923_s17 = scalar_lea.hbm %s2071_s1, %s1076_s5  ;;  %s2046_s5 = smov 256  }
  0x2f   : > { %s924_s14 = scalar_lea.hbm %s923_s17, 32  ;;  %p48_p5 = scmp.lt.s32.totalorder %s47_s30, 7 }
  0x30   : > { %s301_s13 = sshll.u32 %s924_s14, 4  ;;  %p62_p6 = scmp.ne.s32.totalorder %s1497_s29, %s1493_s28  ;;  %s302_s13 = int_to_ptr.hbm [resolvable:$true] %s301_s13 }
  0x31   : > { %1128 = dma.hbm_to_vmem [thread:$0]  (!%p1126_p12), %s302_s13, 512, %s304_s3, %s1662_s4, %s2046_s5, %s2046_s5, %s2048_s6  }
  0x32   : > { %p68_p7 = scmp.ne.s32.totalorder %s1493_s28, %s1489_s27  ;;  %s258_s15 = sand.u32 1, %s1497_s29  }
  0x33   : > { %s2113_s30 = smov (!%p48_p5, %s47_s30), 7  ;;  %p1683_p10 = por %p63_p1, %p62_p6 }
  0x34   : > { %p1689_p12 = por %p69_p2, %p68_p7  ;;  %s50_s19 = ssub.s32 %s2111_s10, %s2113_s30 }
  0x35   : > { %p53_p13 = scmp.eq.s32.totalorder %s50_s19, 0  ;;  %s1046_s27 = sshll.u32 %s258_s15, 5 }
  0x36   : > { %s1075_s24 = sshll.u32 %s2111_s10, 8  ;;  %s2076_s0 = sld [smem:[#allocation27_spill]] }
  0x37   : > { %s1694_s16 = scalar_select %p53_p13, %s1497_s29, %s55_s11  }
  0x38   : > { %s262_s6 = scalar_lea.vmem [#allocation3], %s1046_s27  ;;  %p1123_p0 = pnand %p1139_p11, %p1683_p10 }
  0x39   : > { %2075 = sst [smem:[#allocation25_spill]] %s1694_s16  ;;  %s275_s30 = sshll.u32 %s262_s6, 4  ;;  %s276_s30 = int_to_ptr.vmem [resolvable:$true] %s275_s30 }
  0x3a   : > { %s259_s10 = scalar_lea.sflag [#allocation4], %s258_s15  ;;  %s2077_s19 = smov 16  }
  0x3b   : > { %s2078_s11 = smov 256   ;;  %s1041_s12 = sadd.s32 4294967294, %s1509_s8  }
  0x3c   : > { %s272_s5 = scalar_lea.hbm %s2076_s0, %s1075_s24  ;;  %s117_s14 = sadd.s32 1, %s1473_s23 }
  0x3d   : > { %s273_s1 = sshll.u32 %s272_s5, 4  ;;  %p124_p4 = scmp.ne.s32.totalorder %s1473_s23, %s1469_s22  ;;  %s274_s1 = int_to_ptr.hbm [resolvable:$true] %s273_s1 }
  0x3e   : > { %1125 = dma.hbm_to_vmem [thread:$0]  (!%p1123_p0), %s274_s1, 512, %s276_s30, %s259_s10, %s2078_s11, %s2078_s11, %s2077_s19  }
  0x3f   : > { %s1713_s27 = scalar_select %p1643_p9, %s1473_s23, %s117_s14  }
  0x40   : > { %p1717_p5 = por %p124_p4, %p63_p1  ;;  %p130_p6 = scmp.ne.s32.totalorder %s1469_s22, %s1465_s21 }
  0x41   : > { %2079 = sst [smem:[#allocation26_spill]] %s1713_s27  ;;  %p226_p7 = scmp.eq.s32.totalorder %s1612_s9, 7 }
  0x42   : > { %p232_p10 = scmp.eq.s32.totalorder %s1041_s12, 7  ;;  %p1726_p13 = por %p130_p6, %p69_p2 }
  0x43   : > { %s315_s6 = sand.u32 1, %s1473_s23   ;;  %p1731_p0 = por %p226_p7, %p124_p4 }
  0x44   : > { %p1735_p1 = por %p232_p10, %p130_p6  ;;  %s1053_s17 = sshll.u32 %s315_s6, 6 }
  0x45   : > { %s1077_s24 = sshll.u32 %s1505_s7, 8  ;;  %s317_s14 = scalar_lea.vmem [#allocation8], %s1053_s17 }
  0x46   : > { %s932_s12 = scalar_lea.hbm %s2034_s2, %s1077_s24  ;;  %s328_s0 = sshll.u32 %s317_s14, 4  ;;  %s329_s0 = int_to_ptr.vmem [resolvable:$true] %s328_s0 }
  0x47   : > { %s933_s10 = scalar_lea.hbm %s932_s12, 64  ;;  %p1129_p2 = pnand %p1139_p11, %p1717_p5 }
  0x48   : > { %s326_s16 = sshll.u32 %s933_s10, 4  ;;  %s1056_s29 = sshll.u32 %s315_s6, 7  ;;  %s327_s16 = int_to_ptr.hbm [resolvable:$true] %s326_s16 }
  0x49   : > { %1131 = dma.hbm_to_vmem [thread:$0]  (!%p1129_p2), %s327_s16, 1024, %s329_s0, %s1662_s4, %s2078_s11, %s2078_s11, %s2077_s19  }
  0x4a   : > { %s2084_s26 = sld [smem:[#allocation29_spill]]  ;;  %s342_s13 = scalar_lea.vmem [#allocation9], %s1056_s29 }
  0x4b   : > { %s353_s30 = sshll.u32 %s342_s13, 4  ;;  %s339_s10 = scalar_lea.sflag [#allocation10], %s315_s6  ;;  %s354_s30 = int_to_ptr.vmem [resolvable:$true] %s353_s30 }
  0x4c   : > { %s367_s0 = sand.u32 (!%p1668_p3), 1, %s1493_s28  }
  0x4d   : > { %s1060_s4 = sshll.u32 (!%p1668_p3), %s367_s0, 5  ;;  %s368_s7 = scalar_lea.sflag (!%p1668_p3), [#allocation4], %s367_s0 }
  0x4f   : > { %365 = sbr.rel (%p1668_p3) target bundleno = 390 (0x186), region = 44 }
  0x50   : > { %s941_s27 = scalar_lea.hbm %s2084_s26, %s1077_s24  ;;  %s1760_s26 = scalar_lea.vmem (!%p1668_p3), [#allocation3], %s1060_s4 }
  0x51   : > { %s942_s12 = scalar_lea.hbm %s941_s27, 128 }
  0x52   : > { %s351_s17 = sshll.u32 %s942_s12, 4  ;;  %s352_s17 = int_to_ptr.hbm [resolvable:$true] %s351_s17 }
  0x53   : > { %1134 = dma.hbm_to_vmem [thread:$0]  (!%p1129_p2), %s352_s17, 2048, %s354_s30, %s339_s10, %s2078_s11, %s2078_s11, %s2077_s19  }
  0x54   : > { %1444 = dma.done.wait (%p1689_p12), %s368_s7, 512  }
  0x55   : > { %1446 = vsyncadd (%p1689_p12), %s368_s7, 4294966784  ;;  %s2085_s29 = sld [smem:[#allocation17_spill]]  ;;  %s377_s16 = sand.u32 1, %s1612_s9  }
  0x56   : > { %s378_s25 = scalar_lea.sflag [#allocation7], %s377_s16 }
  0x5b   : > { %s379_s19 = sand.u32 1, %s2085_s29  }
  0x5c   : > { %s1061_s11 = sshll.u32 %s379_s19, 5 }
  0x5d   : > { %s1768_s27 = scalar_lea.vmem [#allocation6], %s1061_s11 }
  0x5e   : > { %1448 = dma.done.wait (%p1639_p8), %s378_s25, 512  }
  0x5f   : > { %1450 = vsyncadd (%p1639_p8), %s378_s25, 4294966784  ;;  %s1775_s5 = sand.u32 1, %s1469_s22  }
  0x60   : > { %s1062_s3 = sshll.u32 %s1775_s5, 6 }
  0x61   : > { %s1778_s6 = scalar_lea.vmem [#allocation8], %s1062_s3 }
  0x62   : > { %1452 = dma.done.wait (%p1726_p13), %s378_s25, 1024  }
  0x63   : > { %1454 = vsyncadd (%p1726_p13), %s378_s25, 4294966272  ;;  %s1063_s9 = sshll.u32 %s1775_s5, 7  ;;  %s398_s24 = scalar_lea.sflag [#allocation10], %s1775_s5 }
  0x64   : > { %s1786_s14 = scalar_lea.vmem [#allocation9], %s1063_s9 }
  0x65   : > { %1456 = dma.done.wait (%p1726_p13), %s398_s24, 2048  }
  0x66   : > { %1458 = vsyncadd (%p1726_p13), %s398_s24, 4294965248  ;;  %s2087_s13 = sld [smem:[#allocation20_spill]]  ;;  %s1064_s30 = sshll.u32 %s1775_s5, 8 }
  0x67   : > { %s1798_s4 = scalar_lea.vmem [#allocation11], %s1064_s30 }
  0x6c   : > { %p457_p8 = scmp.lt.s32.totalorder %s2087_s13, 0  ;;  %s458_s12 = ssub.s32 0, %s2087_s13 }
  0x6d   : > { %s1065_s17 = smin.u32 %s2087_s13, %s458_s12 }
  0x6e   : > { %s460_s10 = sand.u32 3, %s1065_s17  }
  0x6f   : > { %s461_s0 = ssub.s32 0, %s460_s10 }
  0x70   : > { %s2115_s0 = smov (!%p457_p8, %s461_s0), %s460_s10 }
  0x71   : > { %p1066_p9 = scmp.ge.s32.totalorder %s2115_s0, 3 }
  0x73   : > { %469 = sbr.rel (%p1066_p9) target bundleno = 125 (0x7d), region = 64 }
  0x78   : > { %v470_v0 = vld [vmem:[%s1760_s26] sm:$0xff]  ;;  %v471_v1 = vld [vmem:[%s1760_s26 + $0x8] sm:$0xff]  ;;  %v472_v2 = vld [vmem:[%s1760_s26 + $0x10] sm:$0xff] }
  0x79   : > { %474 = vst [vmem:[#allocation2 + $0xb0] sm:$0xff] %v470_v0  ;;  %v473_v3 = vld [vmem:[%s1760_s26 + $0x18] sm:$0xff] }
  0x7a   : > { %475 = vst [vmem:[#allocation2] sm:$0xff] %v471_v1 }
  0x7b   : > { %476 = vst [vmem:[#allocation2 + $0xd8] sm:$0xff] %v472_v2 }
  0x7c   : > { %477 = vst [vmem:[#allocation2 + $0x18] sm:$0xff] %v473_v3 }
  0x7d PF: > { %p1067_p11 = scmp.ne.s32.totalorder %s2115_s0, 3 }
  0x7f   : > { %480 = sbr.rel (%p1067_p11) target bundleno = 137 (0x89), region = 68 }
  0x84   : > { %v1513_v4 = vmov 0.0  }
  0x85   : > { %481 = vst [vmem:[#allocation2 + $0xb0] sm:$0xff] %v1513_v4 }
  0x86   : > { %482 = vst [vmem:[#allocation2] sm:$0xff] %v1513_v4 }
  0x87   : > { %483 = vst [vmem:[#allocation2 + $0xd8] sm:$0xff] %v1513_v4 }
  0x88   : > { %484 = vst [vmem:[#allocation2 + $0x18] sm:$0xff] %v1513_v4 }
  0x89 PF: > { %p1068_p3 = scmp.le.s32.totalorder %s2115_s0, 0 }
  0x8b   : > { %487 = sbr.rel (%p1068_p3) target bundleno = 149 (0x95), region = 72 }
  0x90   : > { %v488_v5 = vld [vmem:[%s1768_s27] sm:$0xff]  ;;  %v489_v6 = vld [vmem:[%s1768_s27 + $0x8] sm:$0xff]  ;;  %v490_v7 = vld [vmem:[%s1768_s27 + $0x10] sm:$0xff] }
  0x91   : > { %492 = vst [vmem:[#allocation2 + $0x50] sm:$0xff] %v488_v5  ;;  %v491_v8 = vld [vmem:[%s1768_s27 + $0x18] sm:$0xff] }
  0x92   : > { %493 = vst [vmem:[#allocation2 + $0x68] sm:$0xff] %v489_v6 }
  0x93   : > { %494 = vst [vmem:[#allocation2 + $0x30] sm:$0xff] %v490_v7 }
  0x94   : > { %495 = vst [vmem:[#allocation2 + $0x48] sm:$0xff] %v491_v8 }
  0x95 PF: > { %p1069_p12 = scmp.ne.s32.totalorder %s2115_s0, 0 }
  0x97   : > { %498 = sbr.rel (%p1069_p12) target bundleno = 161 (0xa1), region = 76 }
  0x9c   : > { %v1514_v9 = vmov 0.0  }
  0x9d   : > { %499 = vst [vmem:[#allocation2 + $0x50] sm:$0xff] %v1514_v9 }
  0x9e   : > { %500 = vst [vmem:[#allocation2 + $0x68] sm:$0xff] %v1514_v9 }
  0x9f   : > { %501 = vst [vmem:[#allocation2 + $0x30] sm:$0xff] %v1514_v9 }
  0xa0   : > { %502 = vst [vmem:[#allocation2 + $0x48] sm:$0xff] %v1514_v9 }
  0xa1 PF: > { %v533_v10 = vld [vmem:[%s1786_s14 + $0x70] sm:$0xff]  ;;  %v534_v11 = vld [vmem:[%s1786_s14 + $0x78] sm:$0xff]  ;;  %v531_v12 = vld [vmem:[%s1786_s14 + $0x60] sm:$0xff]  ;;  %s2088_s26 = sld [smem:[#allocation31_spill]]  ;;  %v1515_v37 = vmov 0   ;;  %s872_s30 = sshll.u32 %s1798_s4, 4  ;;  %s873_s30 = int_to_ptr.vmem [resolvable:$true] %s872_s30 }
  0xa2   : > { %695 = vmatpush.msra.mxu0 %v533_v10  ;;  %1080 = vmatpush.msra.mxu2 %v533_v10  ;;  %v532_v13 = vld [vmem:[%s1786_s14 + $0x68] sm:$0xff]  ;;  %v529_v14 = vld [vmem:[%s1786_s14 + $0x50] sm:$0xff]  ;;  %v530_v15 = vld [vmem:[%s1786_s14 + $0x58] sm:$0xff]  ;;  %s2090_s19 = sld [smem:[#allocation30_spill]]  ;;  %s858_s17 = scalar_lea.sflag [#allocation5], %s1775_s5 }
  0xa3   : > { %760 = vmatpush.msra.mxu1 %v534_v11  ;;  %1096 = vmatpush.msra.mxu3 %v534_v11  ;;  %v527_v16 = vld [vmem:[%s1786_s14 + $0x40] sm:$0xff]  ;;  %v528_v17 = vld [vmem:[%s1786_s14 + $0x48] sm:$0xff]  ;;  %v525_v18 = vld [vmem:[%s1786_s14 + $0x30] sm:$0xff]  ;;  %s2091_s3 = sld [smem:[#allocation20_spill]] }
  0xa4   : > { %696 = vmatpush.msra.mxu0 %v531_v12  ;;  %1081 = vmatpush.msra.mxu2 %v531_v12  ;;  %v526_v19 = vld [vmem:[%s1786_s14 + $0x38] sm:$0xff]  ;;  %v523_v20 = vld [vmem:[%s1786_s14 + $0x20] sm:$0xff]  ;;  %v524_v21 = vld [vmem:[%s1786_s14 + $0x28] sm:$0xff] }
  0xa5   : > { %761 = vmatpush.msra.mxu1 %v532_v13  ;;  %1097 = vmatpush.msra.mxu3 %v532_v13  ;;  %v521_v22 = vld [vmem:[%s1786_s14 + $0x10] sm:$0xff]  ;;  %v522_v23 = vld [vmem:[%s1786_s14 + $0x18] sm:$0xff]  ;;  %v519_v24 = vld [vmem:[%s1786_s14] sm:$0xff] }
  0xa6   : > { %697 = vmatpush.msra.mxu0 %v529_v14  ;;  %1082 = vmatpush.msra.mxu2 %v529_v14  ;;  %v520_v25 = vld [vmem:[%s1786_s14 + $0x8] sm:$0xff]  ;;  %v509_v26 = vld [vmem:[%s1778_s6 + $0x30] sm:$0xff]  ;;  %v510_v27 = vld [vmem:[%s1778_s6 + $0x38] sm:$0xff]  ;;  %s2092_s14 = sld [smem:[#allocation32_spill]] }
  0xa7   : > { %762 = vmatpush.msra.mxu1 %v530_v15  ;;  %1098 = vmatpush.msra.mxu3 %v530_v15  ;;  %v507_v28 = vld [vmem:[%s1778_s6 + $0x20] sm:$0xff]  ;;  %v508_v29 = vld [vmem:[%s1778_s6 + $0x28] sm:$0xff]  ;;  %v505_v30 = vld [vmem:[%s1778_s6 + $0x10] sm:$0xff]  ;;  %s2089_s20 = smov %s2088_s26 }
  0xa8   : > { %698 = vmatpush.msra.mxu0 %v527_v16  ;;  %1083 = vmatpush.msra.mxu2 %v527_v16  ;;  %v506_v31 = vld [vmem:[%s1778_s6 + $0x18] sm:$0xff]  ;;  %v503_v32 = vld [vmem:[%s1778_s6] sm:$0xff]  ;;  %v504_v33 = vld [vmem:[%s1778_s6 + $0x8] sm:$0xff] }
  0xa9   : > { %763 = vmatpush.msra.mxu1 %v528_v17  ;;  %1099 = vmatpush.msra.mxu3 %v528_v17  ;;  %v573_v34 = vld [vmem:[#allocation2 + $0x30] sm:$0xff]  ;;  %v599_v35 = vld [vmem:[%s2088_s26] sm:$0xff]  ;;  %v574_v36 = vld [vmem:[#allocation2 + $0x48] sm:$0xff]  ;;  %s1079_s6 = sshll.u32 %s2091_s3, 8 }
  0xaa   : > { %699 = vmatpush.msra.mxu0 %v525_v18  ;;  %1084 = vmatpush.msra.mxu2 %v525_v18  ;;  %v571_v38 = vld [vmem:[#allocation2 + $0x50] sm:$0xff]  ;;  %v572_v39 = vld [vmem:[#allocation2 + $0x68] sm:$0xff]  ;;  %v569_v40 = vld [vmem:[#allocation2 + $0xd8] sm:$0xff] }
  0xab   : > { %764 = vmatpush.msra.mxu1 %v526_v19  ;;  %1100 = vmatpush.msra.mxu3 %v526_v19  ;;  %v570_v41 = vld [vmem:[#allocation2 + $0x18] sm:$0xff]  ;;  %v567_v42 = vld [vmem:[#allocation2 + $0xb0] sm:$0xff]  ;;  %v568_v43 = vld [vmem:[#allocation2] sm:$0xff] }
  0xac   : > { %700 = vmatpush.msra.mxu0 %v523_v20  ;;  %1085 = vmatpush.msra.mxu2 %v523_v20  ;;  %v551_v44 = vld [vmem:[%s2090_s19] sm:$0xff]  ;;  %v600_v46 = vld [vmem:[%s2089_s20 + $0x8] sm:$0xff]  ;;  %v601_v47 = vld [vmem:[%s2089_s20 + $0x10] sm:$0xff]  ;;  %s871_s13 = scalar_lea.hbm %s2092_s14, %s1079_s6  ;;  %s1387_s26 = scalar_lea.hbm %s2092_s14, 2048 }
  0xad   : > { %765 = vmatpush.msra.mxu1 %v524_v21  ;;  %1101 = vmatpush.msra.mxu3 %v524_v21  ;;  %v559_v45 = vld [vmem:[%s2090_s19 + $0x40] sm:$0xff]  ;;  %v552_v49 = vld [vmem:[%s2090_s19 + $0x8] sm:$0xff]  ;;  %v605_v51 = vld [vmem:[%s2089_s20 + $0x30] sm:$0xff]  ;;  %s874_s12 = sshll.u32 %s871_s13, 4  ;;  %s875_s12 = int_to_ptr.hbm [resolvable:$true] %s874_s12 }
  0xae   : > { %701 = vmatpush.msra.mxu0 %v521_v22  ;;  %1086 = vmatpush.msra.mxu2 %v521_v22  ;;  %v603_v48 = vld [vmem:[%s2089_s20 + $0x20] sm:$0xff]  ;;  %v560_v50 = vld [vmem:[%s2090_s19 + $0x48] sm:$0xff]  ;;  %v602_v52 = vld [vmem:[%s2089_s20 + $0x18] sm:$0xff]  ;;  %s1381_s10 = sshra.s32 %s875_s12, 4  ;;  %s1382_s10 = int_to_ptr.hbm [resolvable:$true] %s1381_s10 }
  0xaf   : > { %766 = vmatpush.msra.mxu1 %v522_v23  ;;  %1102 = vmatpush.msra.mxu3 %v522_v23  ;;  %v604_v53 = vld [vmem:[%s2089_s20 + $0x28] sm:$0xff]  ;;  %v553_v54 = vld [vmem:[%s2090_s19 + $0x10] sm:$0xff]  ;;  %v606_v57 = vld [vmem:[%s2089_s20 + $0x38] sm:$0xff]  ;;  %s1383_s0 = scalar_lea.hbm %s1382_s10, 256  ;;  %p1388_p7 = scmp.lt.s32.totalorder %s1382_s10, %s2092_s14 }
  0xb0   : > { %702 = vmatpush.msra.mxu0 %v519_v24  ;;  %1087 = vmatpush.msra.mxu2 %v519_v24  ;;  %v561_v55 = vld [vmem:[%s2090_s19 + $0x50] sm:$0xff]  ;;  %v608_v56 = vld [vmem:[%s2089_s20 + $0x48] sm:$0xff]  ;;  %v607_v58 = vld [vmem:[%s2089_s20 + $0x40] sm:$0xff]  ;;  %p1384_p4 = scmp.ne.s32.totalorder %s1382_s10, %s1383_s0  ;;  %p1389_p10 = scmp.lt.s32.totalorder %s1387_s26, %s1383_s0 }
  0xb1   : > { %767 = vmatpush.msra.mxu1 %v520_v25  ;;  %1103 = vmatpush.msra.mxu3 %v520_v25  ;;  %v554_v59 = vld [vmem:[%s2090_s19 + $0x18] sm:$0xff]  ;;  %v611_v61 = vld [vmem:[%s2089_s20 + $0x60] sm:$0xff]  ;;  %v609_v62 = vld [vmem:[%s2089_s20 + $0x50] sm:$0xff] }
  0xb2   : > { %703 = vmatpush.msra.mxu0 %v509_v26  ;;  %1088 = vmatpush.msra.mxu2 %v509_v26  ;;  %v562_v60 = vld [vmem:[%s2090_s19 + $0x58] sm:$0xff]  ;;  %v555_v0 = vld [vmem:[%s2090_s19 + $0x20] sm:$0xff]  ;;  %v612_v3 = vld [vmem:[%s2089_s20 + $0x68] sm:$0xff]  ;;  %p1385_p5 = pnand %p1384_p4, %p1731_p0  ;;  %p1390_p13 = por %p1389_p10, %p1388_p7 }
  0xb3   : > { %768 = vmatpush.msra.mxu1 %v510_v27  ;;  %1104 = vmatpush.msra.mxu3 %v510_v27  ;;  %v610_v63 = vld [vmem:[%s2089_s20 + $0x58] sm:$0xff]  ;;  %v563_v1 = vld [vmem:[%s2090_s19 + $0x60] sm:$0xff]  ;;  %v613_v4 = vld [vmem:[%s2089_s20 + $0x70] sm:$0xff] }
  0xb4   : > { %704 = vmatpush.msra.mxu0 %v507_v28  ;;  %1089 = vmatpush.msra.mxu2 %v507_v28  ;;  %v614_v2 = vld [vmem:[%s2089_s20 + $0x78] sm:$0xff]  ;;  %v556_v5 = vld [vmem:[%s2090_s19 + $0x28] sm:$0xff]  ;;  %v557_v7 = vld [vmem:[%s2090_s19 + $0x30] sm:$0xff]  ;;  %p1386_p6 = pneg %p1385_p5 }
  0xb5   : > { %769 = vmatpush.msra.mxu1 %v508_v29  ;;  %1105 = vmatpush.msra.mxu3 %v508_v29  ;;  %v564_v6 = vld [vmem:[%s2090_s19 + $0x68] sm:$0xff]  ;;  %v565_v8 = vld [vmem:[%s2090_s19 + $0x70] sm:$0xff]  ;;  %v558_v9 = vld [vmem:[%s2090_s19 + $0x38] sm:$0xff] }
  0xb6   : > { %705 = vmatpush.msra.mxu0 %v505_v30  ;;  %1090 = vmatpush.msra.mxu2 %v505_v30  ;;  %v566_v10 = vld [vmem:[%s2090_s19 + $0x78] sm:$0xff]  ;;  %p1391_p2 = pnand %p1390_p13, %p1386_p6 }
  0xb7   : > { %770 = vmatpush.msra.mxu1 %v506_v31  ;;  %1106 = vmatpush.msra.mxu3 %v506_v31 }
  0xb8   : > { %706 = vmatpush.msra.mxu0 %v503_v32  ;;  %1091 = vmatpush.msra.mxu2 %v503_v32 }
  0xb9   : > { %771 = vmatpush.msra.mxu1 %v504_v33  ;;  %1107 = vmatpush.msra.mxu3 %v504_v33 }
  0xba   : > { %1244 = vset.pattern.permute.xlu0 %v1515_v37  ;;  %707 = vmatpush.msra.mxu0 %v573_v34 }
  0xbb   : > { %617 = vperm.xlu0 %1244, %v599_v35   ;;  %1092 = vmatpush.msra.mxu2 %v573_v34 }
  0xbc   : > { %772 = vmatpush.msra.mxu1 %v574_v36  ;;  %1108 = vmatpush.msra.mxu3 %v574_v36 }
  0xbd   : > { %708 = vmatpush.msra.mxu0 %v571_v38  ;;  %1093 = vmatpush.msra.mxu2 %v571_v38 }
  0xbe   : > { %773 = vmatpush.msra.mxu1 %v572_v39  ;;  %1109 = vmatpush.msra.mxu3 %v572_v39 }
  0xbf   : > { %709 = vmatpush.msra.mxu0 %v569_v40  ;;  %1094 = vmatpush.msra.mxu2 %v569_v40 }
  0xc0   : > { %774 = vmatpush.msra.mxu1 %v570_v41  ;;  %1110 = vmatpush.msra.mxu3 %v570_v41 }
  0xc1   : > { %710 = vmatpush.msra.mxu0 %v567_v42  ;;  %1095 = vmatpush.msra.mxu2 %v567_v42 }
  0xc2   : > { %775 = vmatpush.msra.mxu1 %v568_v43  ;;  %1111 = vmatpush.msra.mxu3 %v568_v43 }
  0xc3   : > { %711 = vmatmul.f32.vlgmr.msra.gmra.mxu0 %v551_v44  ;;  %735 = vmatmul.f32.vlgmr.msra.gmra.mxu2 %v559_v45 }
  0xc4   : > { %776 = vmatmul.f32.vlgmr.msra.gmra.mxu1 %v551_v44  ;;  %800 = vmatmul.f32.vlgmr.msra.gmra.mxu3 %v559_v45 }
  0xc5   : > { %622 = vperm.xlu0 %1244, %v600_v46   ;;  %1245 = vset.pattern.permute.xlu1 %v1515_v37 }
  0xc6   : > { %627 = vperm.xlu1 %1245, %v601_v47   ;;  %1246 = vset.pattern.permute.xlu2 %v1515_v37 }
  0xc7   : > { %637 = vperm.xlu2 %1246, %v603_v48  }
  0xcb   : > { %714 = vmatmul.f32.gmra.mxu0 %v552_v49  ;;  %738 = vmatmul.f32.gmra.mxu2 %v560_v50 }
  0xcc   : > { %779 = vmatmul.f32.gmra.mxu1 %v552_v49  ;;  %803 = vmatmul.f32.gmra.mxu3 %v560_v50 }
  0xcd   : > { %647 = vperm.xlu0 %1244, %v605_v51  }
  0xce   : > { %632 = vperm.xlu1 %1245, %v602_v52  }
  0xcf   : > { %642 = vperm.xlu2 %1246, %v604_v53  }
  0xd3   : > { %717 = vmatmul.f32.gmra.mxu0 %v553_v54  ;;  %741 = vmatmul.f32.gmra.mxu2 %v561_v55 }
  0xd4   : > { %782 = vmatmul.f32.gmra.mxu1 %v553_v54  ;;  %806 = vmatmul.f32.gmra.mxu3 %v561_v55 }
  0xd5   : > { %662 = vperm.xlu0 %1244, %v608_v56  }
  0xd6   : > { %652 = vperm.xlu1 %1245, %v606_v57  }
  0xd7   : > { %657 = vperm.xlu2 %1246, %v607_v58  }
  0xdb   : > { %720 = vmatmul.f32.gmra.mxu0 %v554_v59  ;;  %744 = vmatmul.f32.gmra.mxu2 %v562_v60 }
  0xdc   : > { %785 = vmatmul.f32.gmra.mxu1 %v554_v59  ;;  %809 = vmatmul.f32.gmra.mxu3 %v562_v60 }
  0xdd   : > { %677 = vperm.xlu0 %1244, %v611_v61  }
  0xde   : > { %667 = vperm.xlu1 %1245, %v609_v62  }
  0xdf   : > { %672 = vperm.xlu2 %1246, %v610_v63  }
  0xe3   : > { %723 = vmatmul.f32.gmra.mxu0 %v555_v0  ;;  %747 = vmatmul.f32.gmra.mxu2 %v563_v1 }
  0xe4   : > { %788 = vmatmul.f32.gmra.mxu1 %v555_v0  ;;  %812 = vmatmul.f32.gmra.mxu3 %v563_v1 }
  0xe5   : > { %692 = vperm.xlu0 %1244, %v614_v2  }
  0xe6   : > { %682 = vperm.xlu1 %1245, %v612_v3  }
  0xe7   : > { %687 = vperm.xlu2 %1246, %v613_v4  }
  0xeb   : > { %726 = vmatmul.f32.gmra.mxu0 %v556_v5  ;;  %750 = vmatmul.f32.gmra.mxu2 %v564_v6 }
  0xec   : > { %791 = vmatmul.f32.gmra.mxu1 %v556_v5  ;;  %815 = vmatmul.f32.gmra.mxu3 %v564_v6 }
  0xf3   : > { %729 = vmatmul.f32.gmra.mxu0 %v557_v7  ;;  %753 = vmatmul.f32.gmra.mxu2 %v565_v8 }
  0xf4   : > { %794 = vmatmul.f32.gmra.mxu1 %v557_v7  ;;  %818 = vmatmul.f32.gmra.mxu3 %v565_v8 }
  0xfb   : > { %732 = vmatmul.f32.gmra.mxu0 %v558_v9  ;;  %756 = vmatmul.f32.gmra.mxu2 %v566_v10 }
  0xfc   : > { %797 = vmatmul.f32.gmra.mxu1 %v558_v9  ;;  %821 = vmatmul.f32.gmra.mxu3 %v566_v10 }
 0x121   : > { %v638_v12 = vpop.permute.xlu2 %637 }
 0x129   : > { %v1932_v15 = vpop.permute.xlu2 %642 }
 0x12d   : > { %v618_v11 = vpop.permute.xlu0 %617 }
 0x131   : > { %v658_v22 = vpop.permute.xlu2 %657 }
 0x137   : > { %v623_v14 = vpop.permute.xlu0 %622 }
 0x138   : > { %v628_v13 = vpop.permute.xlu1 %627 }
 0x139   : > { %v673_v50 = vpop.permute.xlu2 %672 }
 0x13f   : > { %v1935_v21 = vpop.permute.xlu0 %647 }
 0x140   : > { %v712_v16 = vpop.f32.mrf.mxu0  ;;  %v633_v17 = vpop.permute.xlu1 %632 }
 0x141   : > { %v713_v18 = vadd.f32 %v712_v16, %v618_v11  ;;  %v777_v19 = vpop.f32.mrf.mxu1 }
 0x142   : > { %v778_v20 = vadd.f32 %v777_v19, %v618_v11 }
 0x143   : > { %825 = vst [vmem:[%s1798_s4] sm:$0xff] %v713_v18 }
 0x144   : > { %826 = vst [vmem:[%s1798_s4 + $0x8] sm:$0xff] %v778_v20 }
 0x146   : > { %v736_v23 = vpop.f32.mrf.mxu2 }
 0x147   : > { %v737_v24 = vadd.f32 %v736_v23, %v658_v22  ;;  %v801_v25 = vpop.f32.mrf.mxu3  ;;  %v663_v32 = vpop.permute.xlu0 %662 }
 0x148   : > { %v802_v26 = vadd.f32 %v801_v25, %v658_v22  ;;  %v715_v27 = vpop.f32.mrf.mxu0  ;;  %v1940_v31 = vpop.permute.xlu1 %652 }
 0x149   : > { %841 = vst [vmem:[%s1798_s4 + $0x80] sm:$0xff] %v737_v24  ;;  %v716_v28 = vadd.f32 %v715_v27, %v623_v14  ;;  %v780_v29 = vpop.f32.mrf.mxu1 }
 0x14a   : > { %842 = vst [vmem:[%s1798_s4 + $0x88] sm:$0xff] %v802_v26  ;;  %v781_v30 = vadd.f32 %v780_v29, %v623_v14 }
 0x14b   : > { %827 = vst [vmem:[%s1798_s4 + $0x10] sm:$0xff] %v716_v28 }
 0x14c   : > { %828 = vst [vmem:[%s1798_s4 + $0x18] sm:$0xff] %v781_v30 }
 0x14e   : > { %v739_v33 = vpop.f32.mrf.mxu2 }
 0x14f   : > { %v740_v34 = vadd.f32 %v739_v33, %v663_v32  ;;  %v804_v35 = vpop.f32.mrf.mxu3  ;;  %v678_v59 = vpop.permute.xlu0 %677 }
 0x150   : > { %v805_v36 = vadd.f32 %v804_v35, %v663_v32  ;;  %v718_v37 = vpop.f32.mrf.mxu0  ;;  %v668_v41 = vpop.permute.xlu1 %667 }
 0x151   : > { %843 = vst [vmem:[%s1798_s4 + $0x90] sm:$0xff] %v740_v34  ;;  %v719_v38 = vadd.f32 %v718_v37, %v628_v13  ;;  %v783_v39 = vpop.f32.mrf.mxu1 }
 0x152   : > { %844 = vst [vmem:[%s1798_s4 + $0x98] sm:$0xff] %v805_v36  ;;  %v784_v40 = vadd.f32 %v783_v39, %v628_v13  ;;  %v688_v13 = vpop.permute.xlu2 %687 }
 0x153   : > { %829 = vst [vmem:[%s1798_s4 + $0x20] sm:$0xff] %v719_v38 }
 0x154   : > { %830 = vst [vmem:[%s1798_s4 + $0x28] sm:$0xff] %v784_v40 }
 0x156   : > { %v742_v42 = vpop.f32.mrf.mxu2 }
 0x157   : > { %v743_v43 = vadd.f32 %v742_v42, %v668_v41  ;;  %v807_v44 = vpop.f32.mrf.mxu3  ;;  %v693_v22 = vpop.permute.xlu0 %692 }
 0x158   : > { %v808_v45 = vadd.f32 %v807_v44, %v668_v41  ;;  %v721_v46 = vpop.f32.mrf.mxu0  ;;  %v683_v4 = vpop.permute.xlu1 %682 }
 0x159   : > { %845 = vst [vmem:[%s1798_s4 + $0xa0] sm:$0xff] %v743_v43  ;;  %v722_v47 = vadd.f32 %v721_v46, %v633_v17  ;;  %v786_v48 = vpop.f32.mrf.mxu1 }
 0x15a   : > { %846 = vst [vmem:[%s1798_s4 + $0xa8] sm:$0xff] %v808_v45  ;;  %v787_v49 = vadd.f32 %v786_v48, %v633_v17 }
 0x15b   : > { %831 = vst [vmem:[%s1798_s4 + $0x30] sm:$0xff] %v722_v47 }
 0x15c   : > { %832 = vst [vmem:[%s1798_s4 + $0x38] sm:$0xff] %v787_v49 }
 0x15e   : > { %v745_v51 = vpop.f32.mrf.mxu2 }
 0x15f   : > { %v746_v52 = vadd.f32 %v745_v51, %v673_v50  ;;  %v810_v53 = vpop.f32.mrf.mxu3 }
 0x160   : > { %v811_v54 = vadd.f32 %v810_v53, %v673_v50  ;;  %v724_v55 = vpop.f32.mrf.mxu0 }
 0x161   : > { %847 = vst [vmem:[%s1798_s4 + $0xb0] sm:$0xff] %v746_v52  ;;  %v725_v56 = vadd.f32 %v724_v55, %v638_v12  ;;  %v789_v57 = vpop.f32.mrf.mxu1 }
 0x162   : > { %848 = vst [vmem:[%s1798_s4 + $0xb8] sm:$0xff] %v811_v54  ;;  %v790_v58 = vadd.f32 %v789_v57, %v638_v12 }
 0x163   : > { %833 = vst [vmem:[%s1798_s4 + $0x40] sm:$0xff] %v725_v56 }
 0x164   : > { %834 = vst [vmem:[%s1798_s4 + $0x48] sm:$0xff] %v790_v58 }
 0x166   : > { %v748_v60 = vpop.f32.mrf.mxu2 }
 0x167   : > { %v749_v61 = vadd.f32 %v748_v60, %v678_v59  ;;  %v813_v62 = vpop.f32.mrf.mxu3 }
 0x168   : > { %v814_v63 = vadd.f32 %v813_v62, %v678_v59  ;;  %v727_v0 = vpop.f32.mrf.mxu0 }
 0x169   : > { %849 = vst [vmem:[%s1798_s4 + $0xc0] sm:$0xff] %v749_v61  ;;  %v728_v1 = vadd.f32 %v727_v0, %v1932_v15  ;;  %v792_v2 = vpop.f32.mrf.mxu1 }
 0x16a   : > { %850 = vst [vmem:[%s1798_s4 + $0xc8] sm:$0xff] %v814_v63  ;;  %v793_v3 = vadd.f32 %v792_v2, %v1932_v15 }
 0x16b   : > { %835 = vst [vmem:[%s1798_s4 + $0x50] sm:$0xff] %v728_v1 }
 0x16c   : > { %836 = vst [vmem:[%s1798_s4 + $0x58] sm:$0xff] %v793_v3 }
 0x16e   : > { %v751_v5 = vpop.f32.mrf.mxu2 }
 0x16f   : > { %v752_v6 = vadd.f32 %v751_v5, %v683_v4  ;;  %v816_v7 = vpop.f32.mrf.mxu3 }
 0x170   : > { %v817_v8 = vadd.f32 %v816_v7, %v683_v4  ;;  %v730_v9 = vpop.f32.mrf.mxu0 }
 0x171   : > { %851 = vst [vmem:[%s1798_s4 + $0xd0] sm:$0xff] %v752_v6  ;;  %v731_v10 = vadd.f32 %v730_v9, %v1935_v21  ;;  %v795_v11 = vpop.f32.mrf.mxu1 }
 0x172   : > { %852 = vst [vmem:[%s1798_s4 + $0xd8] sm:$0xff] %v817_v8  ;;  %v796_v12 = vadd.f32 %v795_v11, %v1935_v21 }
 0x173   : > { %837 = vst [vmem:[%s1798_s4 + $0x60] sm:$0xff] %v731_v10 }
 0x174   : > { %838 = vst [vmem:[%s1798_s4 + $0x68] sm:$0xff] %v796_v12 }
 0x176   : > { %v754_v14 = vpop.f32.mrf.mxu2 }
 0x177   : > { %v755_v15 = vadd.f32 %v754_v14, %v688_v13  ;;  %v819_v16 = vpop.f32.mrf.mxu3 }
 0x178   : > { %v820_v17 = vadd.f32 %v819_v16, %v688_v13  ;;  %v733_v18 = vpop.f32.mrf.mxu0 }
 0x179   : > { %853 = vst [vmem:[%s1798_s4 + $0xe0] sm:$0xff] %v755_v15  ;;  %v734_v19 = vadd.f32 %v733_v18, %v1940_v31  ;;  %v798_v20 = vpop.f32.mrf.mxu1 }
 0x17a   : > { %854 = vst [vmem:[%s1798_s4 + $0xe8] sm:$0xff] %v820_v17  ;;  %v799_v21 = vadd.f32 %v798_v20, %v1940_v31 }
 0x17b   : > { %839 = vst [vmem:[%s1798_s4 + $0x70] sm:$0xff] %v734_v19 }
 0x17c   : > { %840 = vst [vmem:[%s1798_s4 + $0x78] sm:$0xff] %v799_v21 }
 0x17e   : > { %v757_v23 = vpop.f32.mrf.mxu2 }
 0x17f   : > { %v758_v24 = vadd.f32 %v757_v23, %v693_v22  ;;  %v822_v25 = vpop.f32.mrf.mxu3 }
 0x180   : > { %v823_v26 = vadd.f32 %v822_v25, %v693_v22 }
 0x181   : > { %855 = vst [vmem:[%s1798_s4 + $0xf0] sm:$0xff] %v758_v24 }
 0x182   : > { %856 = vst [vmem:[%s1798_s4 + $0xf8] sm:$0xff] %v823_v26 }
 0x183   : > { %1394 = shalt.err (!%p1391_p2)
}
 0x184   : > { %s1516_s5 = smov 256   ;;  %s1517_s4 = smov 16  }
 0x185   : > { %1120 = dma.vmem_to_hbm [thread:$0]  (%p1731_p0), %s873_s30, 4096, %s875_s12, %s858_s17, %s1516_s5, %s1516_s5, %s1517_s4  }
 0x186 PF: > { %p1140_p8 = scmp.ge.s32.totalorder %s1509_s8, 2  ;;  %s889_s11 = sand.u32 1, %s1465_s21  }
 0x187   : > { %s890_s25 = scalar_lea.sflag [#allocation5], %s889_s11 }
 0x188   : > { %p1136_p9 = pnand %p1140_p8, %p1735_p1 }
 0x18a   : > { %p1137_p11 = pneg %p1136_p9 }
 0x18c   : > { %1460 = dma.done.wait (%p1137_p11), %s890_s25, 4096  }
 0x18d   : > { %1462 = vsyncadd (%p1137_p11), %s890_s25, 4294963200  ;;  %s28_s8 = sadd.s32 1, %s1509_s8   ;;  %s2093_s27 = sld [smem:[#allocation26_spill]] }
 0x18e   : > { %p25_p3 = scmp.ge.s32.totalorder %s28_s8, 10   ;;  %s2094_s24 = sld [smem:[#allocation17_spill]] }
 0x18f   : > { %s2095_s25 = sld [smem:[#allocation18_spill]]  ;;  %s2101_s21 = smov %s1469_s22 }
 0x190   : > { %s2096_s26 = sld [smem:[#allocation24_spill]]  ;;  %s2102_s22 = smov %s1473_s23 }
 0x191   : > { %s2097_s18 = sld [smem:[#allocation19_spill]] }
 0x192   : > { %s2098_s29 = sld [smem:[#allocation25_spill]] }
 0x193   : > { %s2099_s30 = sld [smem:[#allocation21_spill]]  ;;  %s2103_s23 = smov %s2093_s27 }
 0x194   : > { %s2100_s7 = sld [smem:[#allocation22_spill]]  ;;  %s2104_s27 = smov %s1493_s28 }
 0x195   :  { %27 = sbr.rel (!%p25_p3) target bundleno = 20 (0x14), region = 142 }
 0x197   : > { %s2105_s28 = smov %s2097_s18 }
 0x19a   :  { %896 = vsyncpa [#allocation4], 1 }
 0x19b   :  { %898 = vsyncpa [#allocation4 + $0x1], 1 }
 0x19c   :  { %899 = vsyncpa [#allocation7], 1 }
 0x19d   :  { %901 = vsyncpa [#allocation7 + $0x1], 1 }
 0x19e   :  { %902 = vsyncpa [#allocation10], 1 }
 0x19f   :  { %904 = vsyncpa [#allocation10 + $0x1], 1 }
 0x1a0   :  { %905 = vsyncpa [#allocation5], 1 }
 0x1a1   :  { %907 = vsyncpa [#allocation5 + $0x1], 1 }

</bundles_post_ra>
